<compile_context>
chip_gen: v7x
topology: tpu7x:2x2x1
jax: 0.10.0
libtpu: 0.0.40
codegen_flags: <defaults>
</compile_context>

<pallas_src>
import jax
import jax.numpy as jnp
from jax.experimental import pallas as pl
from jax.experimental.pallas import tpu as pltpu


# ---------------------------------------------------------------------------
# Pallas kernel: one lane-dense tile of edges
#   c*_ref: (8, TILE_E)  rows 0-2 position, rows 3-5 angle, rows 6-7 zero pad
#   a_ref : (1, TILE_E)
# ---------------------------------------------------------------------------
def gauss_edge_kernel(sig_ref, c1_ref, c2_ref, a_ref):
    # sig_ref: SMEM (2,) = [inverse_sigma1, inverse_sigma2]
    s1 = sig_ref[0]
    s2 = sig_ref[1]
    s1sq = s1 * s1
    s2sq = s2 * s2

    c1 = c1_ref[...].astype(jnp.float32)  # (8, TILE_E)
    c2 = c2_ref[...].astype(jnp.float32)

    # Single mask: rows 0-2 are position channels, rows 3-5 are angle channels,
    # rows 6-7 are zero padding (so the angle branch needs no upper bound).
    row = jax.lax.broadcasted_iota(jnp.int32, c1.shape, 0)
    is_pos = row < 3

    diff = c1 - c2
    d = jnp.sum(jnp.where(is_pos, diff * diff, 0.0), axis=0, keepdims=True)
    dot = jnp.sum(jnp.where(is_pos, 0.0, c1 * c2), axis=0, keepdims=True)
    t = (1.0 - dot) ** 2

    a_ref[...] = jnp.exp(-(d * s1sq + t * s2sq))


# ---------------------------------------------------------------------------
# Wrapper: gather endpoints directly into the lane-dense layout, call kernel
# ---------------------------------------------------------------------------
def _round_up(x, m):
    return pl.cdiv(x, m) * m


def gauss_kernel_forward(edge_coordinate, edge_index, inverse_sigma1,
                         inverse_sigma2, *, tile_e=32768,
                         input_dtype=jnp.float32):
    e = edge_index.shape[1]

    # --- node table: (N, 6) -> (8, N), channels on sublanes (N-sized, cheap)
    coord8 = jnp.pad(edge_coordinate.astype(jnp.float32).T, ((0, 2), (0, 0)))
    coord8 = coord8.astype(input_dtype)

    # --- tile sizing ---------------------------------------------------------
    # Lane-dense tiles (multiple of 128).  Cap at 65536 lanes so the
    # double-buffered working set (~136 B/lane) stays under v5e's 16 MiB
    # scoped-VMEM default.  Keep >= 2 grid steps when there is enough work so
    # v7x's two TensorCores both get a share, and spread the edges evenly
    # across tiles to minimize last-tile padding waste.
    te_cap = max(128, (min(tile_e, 65536) // 128) * 128)
    epad_min = _round_up(max(e, 1), 128)
    n_tiles = pl.cdiv(epad_min, te_cap)
    if epad_min >= 256:
        n_tiles = max(n_tiles, 2)
    te = _round_up(pl.cdiv(epad_min, n_tiles), 128)
    epad = n_tiles * te

    # --- edge indices padded once (cheap int32), then gather straight into
    #     the (8, epad) layout the kernel wants (no E-sized f32 pad/transpose)
    idx = jnp.pad(edge_index.astype(jnp.int32), ((0, 0), (0, epad - e)))
    c1 = jnp.take(coord8, idx[0], axis=1)  # (8, epad)
    c2 = jnp.take(coord8, idx[1], axis=1)  # (8, epad)

    sig = jnp.concatenate([
        jnp.reshape(inverse_sigma1, (-1,))[:1],
        jnp.reshape(inverse_sigma2, (-1,))[:1],
    ]).astype(jnp.float32)  # (2,) -> SMEM via scalar prefetch

    out = pl.pallas_call(
        gauss_edge_kernel,
        out_shape=jax.ShapeDtypeStruct((1, epad), jnp.float32),
        grid_spec=pltpu.PrefetchScalarGridSpec(
            num_scalar_prefetch=1,
            grid=(n_tiles,),
            in_specs=[
                pl.BlockSpec((8, te), lambda i, sig: (0, i)),
                pl.BlockSpec((8, te), lambda i, sig: (0, i)),
            ],
            out_specs=pl.BlockSpec((1, te), lambda i, sig: (0, i)),
        ),
        compiler_params=pltpu.CompilerParams(
            dimension_semantics=("parallel",)),
    )(sig, c1, c2)

    return out[0, :e]


# ---------------------------------------------------------------------------
if __name__ == "__main__":
    key = jax.random.PRNGKey(0)
    k_c, k_ei, k_s1, k_s2 = jax.random.split(key, 4)

    num_nodes = 32
    num_edges = 64

    edge_coordinate = jax.random.normal(k_c, (num_nodes, 6), jnp.float32)
    edge_index = jax.random.randint(k_ei, (2, num_edges), 0, num_nodes,
                                    dtype=jnp.int32)
    # mirror the PyTorch parameter init ranges
    inverse_sigma1 = jax.random.uniform(k_s1, (1,), jnp.float32) * 0.0001 + 0.001
    inverse_sigma2 = jax.random.uniform(k_s2, (1,), jnp.float32) + 1.0

    a = gauss_kernel_forward(edge_coordinate, edge_index,
                             inverse_sigma1, inverse_sigma2)
    a = jax.block_until_ready(a)

    # pure-JAX reference (matches the PyTorch module exactly)
    pos1 = edge_coordinate[edge_index[0], 0:3]
    pos2 = edge_coordinate[edge_index[1], 0:3]
    ang1 = edge_coordinate[edge_index[0], 3:6]
    ang2 = edge_coordinate[edge_index[1], 3:6]
    D = ((pos1 - pos2) ** 2).sum(-1)
    T = (1.0 - (ang1 * ang2).sum(-1)) ** 2
    a_ref = jnp.exp(-(D * inverse_sigma1 ** 2 + T * inverse_sigma2 ** 2))

    assert a.shape == (num_edges,)
    assert bool(jnp.all(jnp.isfinite(a)))
    assert bool(jnp.allclose(a, a_ref, rtol=1e-5, atol=1e-6))
    print("KERNEL_OK")
</pallas_src>

<mosaic_0001>
module attributes {stable_mosaic.version = 11 : i64} {
  func.func @gauss_edge_kernel(%arg0: i32, %arg1: memref<2xf32, #tpu.memory_space<smem>>, %arg2: memref<8x128xf32, #tpu.memory_space<vmem>>, %arg3: memref<8x128xf32, #tpu.memory_space<vmem>>, %arg4: memref<1x128xf32, #tpu.memory_space<vmem>>) attributes {dimension_semantics = [#tpu.dimension_semantics<parallel>], iteration_bounds = array<i64: 1>, scalar_prefetch = 1 : i64, scratch_operands = 0 : i64, tpu.core_type = #tpu.core_type<tc>, window_params = [{transform_indices = @transform_0, window_bounds = array<i64: 8, 128>}, {transform_indices = @transform_1, window_bounds = array<i64: 8, 128>}, {transform_indices = @transform_2, window_bounds = array<i64: 1, 128>}]} {
    %c0 = arith.constant 0 : index
    %0 = memref.load %arg1[%c0] : memref<2xf32, #tpu.memory_space<smem>>
    %c1 = arith.constant 1 : index
    %1 = memref.load %arg1[%c1] : memref<2xf32, #tpu.memory_space<smem>>
    %2 = arith.mulf %0, %0 : f32
    %3 = arith.mulf %1, %1 : f32
    %c0_0 = arith.constant 0 : index
    %c0_1 = arith.constant 0 : index
    %4 = vector.load %arg2[%c0_0, %c0_1] : memref<8x128xf32, #tpu.memory_space<vmem>>, vector<8x128xf32>
    %c0_2 = arith.constant 0 : index
    %c0_3 = arith.constant 0 : index
    %5 = vector.load %arg3[%c0_2, %c0_3] : memref<8x128xf32, #tpu.memory_space<vmem>>, vector<8x128xf32>
    %6 = tpu.iota {dimensions = array<i32: 0>} : vector<8x128xi32>
    %c3_i32 = arith.constant 3 : i32
    %7 = vector.broadcast %c3_i32 : i32 to vector<8x128xi32>
    %8 = arith.cmpi slt, %6, %7 : vector<8x128xi32>
    %9 = arith.subf %4, %5 : vector<8x128xf32>
    %10 = arith.mulf %9, %9 : vector<8x128xf32>
    %cst = arith.constant 0.000000e+00 : f32
    %11 = vector.broadcast %cst : f32 to vector<8x128xf32>
    %12 = arith.select %8, %10, %11 : vector<8x128xi1>, vector<8x128xf32>
    %cst_4 = arith.constant dense<0.000000e+00> : vector<128xf32>
    %13 = vector.multi_reduction <add>, %12, %cst_4 [0] : vector<8x128xf32> to vector<128xf32>
    %14 = vector.shape_cast %13 : vector<128xf32> to vector<1x128xf32>
    %15 = arith.mulf %4, %5 : vector<8x128xf32>
    %cst_5 = arith.constant 0.000000e+00 : f32
    %16 = vector.broadcast %cst_5 : f32 to vector<8x128xf32>
    %17 = arith.select %8, %16, %15 : vector<8x128xi1>, vector<8x128xf32>
    %cst_6 = arith.constant dense<0.000000e+00> : vector<128xf32>
    %18 = vector.multi_reduction <add>, %17, %cst_6 [0] : vector<8x128xf32> to vector<128xf32>
    %19 = vector.shape_cast %18 : vector<128xf32> to vector<1x128xf32>
    %cst_7 = arith.constant 1.000000e+00 : f32
    %20 = vector.broadcast %cst_7 : f32 to vector<1x128xf32>
    %21 = arith.subf %20, %19 : vector<1x128xf32>
    %22 = arith.mulf %21, %21 : vector<1x128xf32>
    %23 = vector.broadcast %2 : f32 to vector<1x128xf32>
    %24 = arith.mulf %14, %23 : vector<1x128xf32>
    %25 = vector.broadcast %3 : f32 to vector<1x128xf32>
    %26 = arith.mulf %22, %25 : vector<1x128xf32>
    %27 = arith.addf %24, %26 : vector<1x128xf32>
    %cst_8 = arith.constant 0.000000e+00 : f32
    %28 = vector.broadcast %cst_8 : f32 to vector<1x128xf32>
    %29 = arith.subf %28, %27 : vector<1x128xf32>
    %30 = math.exp %29 : vector<1x128xf32>
    %c0_9 = arith.constant 0 : index
    %c0_10 = arith.constant 0 : index
    %31 = vector.load %arg4[%c0_9, %c0_10] : memref<1x128xf32, #tpu.memory_space<vmem>>, vector<1x128xf32>
    tpu.vector_store %arg4[%c0_9, %c0_10], %30 {strides = array<i32>} : memref<1x128xf32, #tpu.memory_space<vmem>>, vector<1x128xf32>,
    return
  }
  func.func @transform_0(%arg0: i32, %arg1: memref<2xf32, #tpu.memory_space<smem>>) -> (i32, i32) {
    %c0_i32 = arith.constant 0 : i32
    %c0_i32_0 = arith.constant 0 : i32
    return %c0_i32, %arg0 : i32, i32
  }
  func.func @transform_1(%arg0: i32, %arg1: memref<2xf32, #tpu.memory_space<smem>>) -> (i32, i32) {
    %c0_i32 = arith.constant 0 : i32
    %c0_i32_0 = arith.constant 0 : i32
    return %c0_i32, %arg0 : i32, i32
  }
  func.func @transform_2(%arg0: i32, %arg1: memref<2xf32, #tpu.memory_space<smem>>) -> (i32, i32) {
    %c0_i32 = arith.constant 0 : i32
    %c0_i32_0 = arith.constant 0 : i32
    return %c0_i32, %arg0 : i32, i32
  }
}

</mosaic_0001>

<bundles_post_ra>
// kernel: tpu_custom_call.1
= control target key start
LH: loop header
LB: loop body
LE: loop exit
PB: predicated region body
PF: predicated region fallthrough
CT: control target
= control target key end

     0   :  { %s257_s0 = inlined_call_operand.hbm [shape: f32[2], index: 0, kind: input, shape index: {}]   ;;  %s258_s1 = inlined_call_operand.hbm [shape: f32[8,128], index: 1, kind: input, shape index: {}]   ;;  %s259_s2 = inlined_call_operand.hbm [shape: f32[8,128], index: 2, kind: input, shape index: {}]   ;;  %s260_s3 = inlined_call_operand.hbm [shape: f32[1,128], index: 3, kind: output, shape index: {}]  }
   0x1   :  { %s101_s14 = scalar_lea.hbm %s257_s0, 16 }
   0x2   :  { %p102_p0 = scmp.ne.s32.totalorder %s257_s0, %s101_s14  ;;  %p105_p1 = scmp.lt.u32.totalorder %s101_s14, %s257_s0 }
   0x4   :  { %p107_p2 = pnand %p105_p1, %p102_p0 }
   0x6   :  { %110 = shalt.err (!%p107_p2)  }
   0x7   :  { %s185_s19 = smov [#allocation3]  }
   0x8   :  { %9 = dma.hbm_to_smem %s257_s0, 16, %s185_s19, [#allocation2] }
   0x9   :  { %177 = dma.done.wait [#allocation2], 16 }
   0xa   :  { %178 = vsyncadd [#allocation2], 4294967280 }
   0xb   :  { %11 = sfence }
   0xc   :  { %12 = vsyncpa [#allocation5], 0 }
   0xd   :  { %13 = vsyncpa [#allocation8], 0 }
   0xe   :  { %14 = vsyncpa [#allocation6], 0  ;;  %s186_s22 = smov [#allocation4]   ;;  %s187_s24 = smov [#allocation7]  }
   0xf   :  { %s21_s23 = sshll.u32 %s186_s22, 4  ;;  %s31_s25 = sshll.u32 %s187_s24, 4  ;;  %s22_s23 = int_to_ptr.vmem [resolvable:$true] %s21_s23  ;;  %s32_s25 = int_to_ptr.vmem [resolvable:$true] %s31_s25 }
  0x10   :  { %s111_s28 = scalar_lea.hbm %s258_s1, 128 }
  0x11   :  { %p112_p3 = scmp.ne.s32.totalorder %s258_s1, %s111_s28  ;;  %p115_p4 = scmp.lt.u32.totalorder %s111_s28, %s258_s1 }
  0x13   :  { %p117_p5 = pnand %p115_p4, %p112_p3 }
  0x15   :  { %120 = shalt.err (!%p117_p5)
}
  0x16   :  { %s121_s5 = scalar_lea.vmem %s22_s23, 128  ;;  %p126_p7 = scmp.lt.s32.totalorder %s22_s23, %s22_s23 }
  0x17   :  { %p122_p6 = scmp.ne.s32.totalorder %s22_s23, %s121_s5  ;;  %p127_p8 = scmp.lt.s32.totalorder %s121_s5, %s121_s5 }
  0x19   :  { %p128_p9 = por %p127_p8, %p126_p7 }
  0x1b   :  { %p129_p10 = pnand %p128_p9, %p122_p6 }
  0x1d   :  { %132 = shalt.err (!%p129_p10)
}
  0x1e   :  { %24 = dma.hbm_to_vmem [thread:$0]  %s258_s1, 128, %s22_s23, [#allocation5]  }
  0x1f   :  { %s133_s10 = scalar_lea.hbm %s259_s2, 128 }
  0x20   :  { %p134_p11 = scmp.ne.s32.totalorder %s259_s2, %s133_s10  ;;  %p137_p12 = scmp.lt.u32.totalorder %s133_s10, %s259_s2 }
  0x22   :  { %p139_p13 = pnand %p137_p12, %p134_p11 }
  0x24   :  { %142 = shalt.err (!%p139_p13)
}
  0x25   :  { %s143_s15 = scalar_lea.vmem %s32_s25, 128  ;;  %p148_p1 = scmp.lt.s32.totalorder %s32_s25, %s32_s25 }
  0x26   :  { %p144_p0 = scmp.ne.s32.totalorder %s32_s25, %s143_s15  ;;  %p149_p2 = scmp.lt.s32.totalorder %s143_s15, %s143_s15 }
  0x28   :  { %p150_p3 = por %p149_p2, %p148_p1 }
  0x2a   :  { %p151_p4 = pnand %p150_p3, %p144_p0 }
  0x2c   :  { %154 = shalt.err (!%p151_p4)
}
  0x2d   :  { %34 = dma.hbm_to_vmem [thread:$0]  %s259_s2, 128, %s32_s25, [#allocation8]  }
  0x2e   :  { %179 = dma.done.wait [#allocation5], 128  }
  0x2f   :  { %180 = vsyncadd [#allocation5], 4294967168 }
  0x30   :  { %181 = dma.done.wait [#allocation8], 128  }
  0x31   :  { %182 = vsyncadd [#allocation8], 4294967168  ;;  %v47_v0 = vlaneseq  ;;  %v45_v2 = vld [vmem:[#allocation4] sm:$0xff]  ;;  %v46_v3 = vld [vmem:[#allocation7] sm:$0xff]  ;;  %s41_s17 = sld [smem:[#allocation3]]  ;;  %s94_s18 = sld [smem:[#allocation3 + $0x1]] }
  0x32   :  { %v50_v4 = vsub.f32 %v45_v2, %v46_v3  ;;  %v59_v5 = vmul.f32 %v46_v3, %v45_v2  ;;  %s188_s20 = smov [#allocation9]  }
  0x33   :  { %v48_v1 = vshrl.u32 %v47_v0, 7  ;;  %s84_s21 = sshll.u32 %s188_s20, 4  ;;  %s85_s21 = int_to_ptr.vmem [resolvable:$true] %s84_s21 }
  0x34   :  { %v51_v6 = vmul.f32 %v50_v4, %v50_v4  ;;  %s155_s22 = scalar_lea.vmem %s85_s21, 16  ;;  %s159_s23 = scalar_lea.vmem %s85_s21, 32 }
  0x35   :  { %vm49_vm0 = vcmp.lt.s32.totalorder %v48_v1, 3  ;;  %p156_p5 = scmp.ne.s32.totalorder %s85_s21, %s155_s22  ;;  %p160_p6 = scmp.lt.s32.totalorder %s85_s21, %s85_s21 }
  0x36   :  { %v60_v7 = vsel %vm49_vm0, 0.0, %v59_v5  ;;  %v52_v9 = vsel %vm49_vm0, %v51_v6, 0.0  ;;  %p161_p7 = scmp.lt.s32.totalorder %s159_s23, %s155_s22 }
  0x37   :  { %v61_v8 = vrot.slane %v60_v7, 4  ;;  %v53_v10 = vrot.slane %v52_v9, 4  ;;  %s43_s2 = smul.f32 %s41_s17, %s41_s17 }
  0x38   :  { %s44_s19 = smul.f32 %s94_s18, %s94_s18  ;;  %p162_p8 = por %p161_p7, %p160_p6 }
  0x39   :  { %v62_v11 = vadd.f32 %v61_v8, %v60_v7  ;;  %v54_v12 = vadd.f32 %v53_v10, %v52_v9  ;;  %v69_v20 = vstv %s43_s2 }
  0x3a   :  { %v71_v23 = vstv %s44_s19  ;;  %p163_p9 = pnand %p162_p8, %p156_p5 }
  0x3b   :  { %v63_v13 = vrot.slane %v62_v11, 2  ;;  %v55_v14 = vrot.slane %v54_v12, 2 }
  0x3d   :  { %v64_v15 = vadd.f32 %v63_v13, %v62_v11  ;;  %v56_v16 = vadd.f32 %v55_v14, %v54_v12 }
  0x3f   :  { %v65_v17 = vrot.slane %v64_v15, 1  ;;  %v57_v18 = vrot.slane %v56_v16, 1 }
  0x41   :  { %v66_v19 = vadd.f32 %v65_v17, %v64_v15  ;;  %v58_v21 = vadd.f32 %v57_v18, %v56_v16 }
  0x43   :  { %v67_v22 = vsub.f32 1.0, %v66_v19  ;;  %v70_v25 = vmul.f32 %v69_v20, %v58_v21 }
  0x45   :  { %v68_v24 = vmul.f32 %v67_v22, %v67_v22 }
  0x47   :  { %v72_v26 = vmul.f32 %v71_v23, %v68_v24 }
  0x49   :  { %v73_v27 = vadd.f32 %v72_v26, %v70_v25 }
  0x4b   :  { %v74_v28 = vsub.f32 0.0, %v73_v27 }
  0x4d   :  { %v75_v29 = vmul.f32 1.442695, %v74_v28 }
  0x4f   :  { %99 = vpow2.f32 %v75_v29 }
  0x59   :  { %v100_v30 = vpop.eup %99 }
  0x5a   :  { %77 = vst [vmem:[#allocation9] sm:$0x1] %v100_v30 }
  0x5b   :  { %166 = shalt.err (!%p163_p9)
}
  0x5c   :  { %s167_s26 = scalar_lea.hbm %s260_s3, 16 }
  0x5d   :  { %p168_p10 = scmp.ne.s32.totalorder %s260_s3, %s167_s26  ;;  %p171_p11 = scmp.lt.u32.totalorder %s167_s26, %s260_s3 }
  0x5f   :  { %p173_p12 = pnand %p171_p11, %p168_p10 }
  0x61   :  { %176 = shalt.err (!%p173_p12)
}
  0x62   :  { %87 = dma.vmem_to_hbm [thread:$0]  %s85_s21, 16, %s260_s3, [#allocation6]  }
  0x63   :  { %183 = dma.done.wait [#allocation6], 16  }
  0x64   :  { %184 = vsyncadd [#allocation6], 4294967280 }
  0x65   :  { %91 = vsyncpa [#allocation5], 1 }
  0x66   :  { %92 = vsyncpa [#allocation8], 1 }
  0x67   :  { %93 = vsyncpa [#allocation6], 1 }

</bundles_post_ra>
